<compile_context>
chip_gen: v7x
topology: tpu7x:2x2x1
jax: 0.10.0
libtpu: 0.0.40
codegen_flags: <defaults>
</compile_context>

<pallas_src>
import functools

import jax
import jax.numpy as jnp
from jax.experimental import pallas as pl
from jax.experimental.pallas import tpu as pltpu


# Compose([HorizontalFlip(), VerticalFlip()]) -> 4 transform chains (hflip, vflip):
_FLIPS = ((False, False), (True, False), (False, True), (True, True))
_MAX_HW_TILE = 16384       # spatial lanes per tile (multiple of 128)


def _round_up(x, m):
    return (x + m - 1) // m * m


# ---------------------------------------------------------------------------
# Fused Pallas kernel: TTA-merged 3x3 conv over a flattened, padded halo window
# ---------------------------------------------------------------------------
def _tta_conv_kernel(win_ref, w_ref, b_ref, o_ref, *, row_stride, ksize):
    # win_ref : (1, 1, Cin, win)    bf16 halo window of the zero-padded image, spatially
    #                               flattened with row stride `row_stride` (= W + 2*pad)
    # w_ref   : (K*K, Cout, Cin)    bf16 per-tap weights, already averaged over the 4
    #                               TTA flip chains (Merger 'mean' folded in)
    # b_ref   : (Cout, 1)           f32 conv bias
    # o_ref   : (1, Cout, hw_tile)  f32 merged prediction tile (lane-dense)
    xwin = win_ref[0, 0]                      # (Cin, win)
    hw = o_ref.shape[2]

    # Build the KxK receptive field in-kernel: tap (dy, dx) is the window shifted by
    # dy*row_stride + dx lanes.  One tiny MXU dot per tap; the partial products are
    # independent and summed afterwards (no serialized dot -> add -> dot chain).
    partials = []
    for dy in range(ksize):
        for dx in range(ksize):
            off = dy * row_stride + dx
            tap = xwin[:, off:off + hw]                               # (Cin, hw)
            partials.append(jnp.dot(w_ref[dy * ksize + dx], tap,
                                    preferred_element_type=jnp.float32))
    acc = functools.reduce(lambda a, b: a + b, partials)              # (Cout, hw) f32

    o_ref[0] = (acc + b_ref[...]).astype(o_ref.dtype)


# ---------------------------------------------------------------------------
# Glue (plain JAX): flip-averaged weights, halo windows, spatial tiling choice
# ---------------------------------------------------------------------------
def _tta_merged_weight(w_oihw):
    """Exact fusion of {augment -> conv -> de-augment -> Merger('mean')}:
    deaug_t(conv(aug_t(x), w)) == conv(x, flip_t(w)) for the linear 'same'-padded conv,
    and the mean over the T=4 transforms is linear, so the whole wrapper collapses to
    ONE conv with the flip-averaged weight (the 1/T of Merger.result folded in)."""
    cout, cin, k, _ = w_oihw.shape
    acc = jnp.zeros_like(w_oihw)
    for hflip, vflip in _FLIPS:
        wt = w_oihw
        if hflip:
            wt = jnp.flip(wt, axis=3)        # flip the dx (width) taps
        if vflip:
            wt = jnp.flip(wt, axis=2)        # flip the dy (height) taps
        acc = acc + wt
    w_avg = acc / float(len(_FLIPS))
    # (K*K, Cout, Cin): tap-major stack matching the in-kernel (dy, dx) loop order.
    return jnp.transpose(w_avg, (2, 3, 0, 1)).reshape(k * k, cout, cin)


def _pick_hw_tile(hw_valid, n_batch, max_tile=_MAX_HW_TILE):
    """Fixed lane-dense spatial tile (multiple of 128).  The flat output is padded up to
    n_tiles*hw_tile in glue, so there are never ragged or non-128-aligned blocks.  When
    N == 1 the spatial axis is split so both v7x TensorCores get work."""
    tile = min(max_tile, _round_up(hw_valid, 128))
    if n_batch == 1 and tile >= hw_valid and hw_valid > 256:
        tile = _round_up((hw_valid + 1) // 2, 128)
    return tile


# ---------------------------------------------------------------------------
# SegmentationTTAWrapper.forward
# ---------------------------------------------------------------------------
@jax.jit
def segmentation_tta_forward(image_nchw, w_oihw, bias):
    """Equivalent of SegmentationTTAWrapper(conv_model, Compose([HFlip, VFlip]), 'mean')(image)."""
    x = image_nchw.astype(jnp.float32)
    N, Cin, H, W = x.shape
    Cout, _, K, _ = w_oihw.shape
    pad = K // 2
    Hp, Wp = H + 2 * pad, W + 2 * pad       # zero-'same'-padded spatial extents
    HW_valid = H * Wp                        # flat outputs covering all valid (y, x)
    halo = (K - 1) * Wp + (K - 1)            # extra trailing lanes a tile's taps may read

    hw_tile = _pick_hw_tile(HW_valid, N)
    n_tiles = (HW_valid + hw_tile - 1) // hw_tile
    HW_pad = n_tiles * hw_tile
    win = hw_tile + halo

    # Zero-pad spatially, flatten, cast to bf16 (halves the dominant HBM read; the MXU
    # dots still accumulate in f32), and extend so every tile's halo window exists.
    xp = jnp.pad(x, ((0, 0), (0, 0), (pad, pad), (pad, pad)))          # (N, Cin, Hp, Wp)
    xf = xp.reshape(N, Cin, Hp * Wp).astype(jnp.bfloat16)
    xf = jnp.pad(xf, ((0, 0), (0, 0), (0, HW_pad + halo - Hp * Wp)))

    # Per-tile halo windows (~halo/hw_tile duplication only — the 9x im2col slab is gone).
    windows = jnp.stack(
        [xf[:, :, s * hw_tile: s * hw_tile + win] for s in range(n_tiles)],
        axis=1)                                                         # (N, n_tiles, Cin, win)

    w_taps = _tta_merged_weight(w_oihw.astype(jnp.float32)).astype(jnp.bfloat16)
    b2d = bias.astype(jnp.float32).reshape(Cout, 1)

    kernel = functools.partial(_tta_conv_kernel, row_stride=Wp, ksize=K)

    out_flat = pl.pallas_call(
        kernel,
        out_shape=jax.ShapeDtypeStruct((N, Cout, HW_pad), jnp.float32),
        grid_spec=pltpu.PrefetchScalarGridSpec(
            num_scalar_prefetch=0,
            grid=(N, n_tiles),
            in_specs=[
                pl.BlockSpec((1, 1, Cin, win), lambda n, s: (n, s, 0, 0)),
                pl.BlockSpec((K * K, Cout, Cin), lambda n, s: (0, 0, 0)),
                pl.BlockSpec((Cout, 1), lambda n, s: (0, 0)),
            ],
            out_specs=pl.BlockSpec((1, Cout, hw_tile), lambda n, s: (n, 0, s)),
        ),
        compiler_params=pltpu.CompilerParams(
            dimension_semantics=("parallel", "parallel")),
    )(windows, w_taps, b2d)

    # Flat padded-grid outputs -> (N, Cout, H, W): drop tail padding and junk columns.
    out = out_flat[:, :, :HW_valid].reshape(N, Cout, H, Wp)[:, :, :, :W]
    return out


# ---------------------------------------------------------------------------
# Plain-JAX reference: literal augment -> conv -> de-augment -> Merger('mean')
# ---------------------------------------------------------------------------
def _reference(image_nchw, w_oihw, bias):
    x = image_nchw.astype(jnp.float32)
    Cout = w_oihw.shape[0]
    outs = []
    for hflip, vflip in _FLIPS:
        xa = x
        if hflip:
            xa = jnp.flip(xa, axis=3)
        if vflip:
            xa = jnp.flip(xa, axis=2)
        ya = jax.lax.conv_general_dilated(
            xa, w_oihw.astype(jnp.float32), window_strides=(1, 1), padding="SAME",
            dimension_numbers=("NCHW", "OIHW", "NCHW"),
            precision=jax.lax.Precision.HIGHEST) + bias.reshape(1, Cout, 1, 1)
        if hflip:
            ya = jnp.flip(ya, axis=3)
        if vflip:
            ya = jnp.flip(ya, axis=2)
        outs.append(ya)
    return sum(outs) / float(len(outs))


if __name__ == "__main__":
    key = jax.random.PRNGKey(0)
    k_img, k_w, k_b = jax.random.split(key, 3)

    N, Cin, H, W = 2, 4, 16, 16
    Cout, K = 3, 3

    image = jax.random.normal(k_img, (N, Cin, H, W), dtype=jnp.float32)          # NCHW input
    weight = 0.1 * jax.random.normal(k_w, (Cout, Cin, K, K), dtype=jnp.float32)  # Conv2d OIHW
    bias = 0.1 * jax.random.normal(k_b, (Cout,), dtype=jnp.float32)

    out = segmentation_tta_forward(image, weight, bias)
    out = jax.block_until_ready(out)

    ref = _reference(image, weight, bias)
    assert out.shape == (N, Cout, H, W), out.shape
    max_err = float(jnp.max(jnp.abs(out - ref)))
    # bf16 image/weights with f32 accumulation inside the kernel vs. an f32 reference.
    assert jnp.allclose(out, ref, rtol=2e-2, atol=2e-2), max_err

    print("KERNEL_OK")
</pallas_src>

<mosaic_0001>
module attributes {stable_mosaic.version = 11 : i64} {
  func.func @_tta_conv_kernel(%arg0: i32, %arg1: i32, %arg2: memref<1x1x4x422xbf16, #tpu.memory_space<vmem>>, %arg3: memref<9x3x4xbf16, #tpu.memory_space<vmem>>, %arg4: memref<3x1xf32, #tpu.memory_space<vmem>>, %arg5: memref<1x3x384xf32, #tpu.memory_space<vmem>>) attributes {dimension_semantics = [#tpu.dimension_semantics<parallel>, #tpu.dimension_semantics<parallel>], iteration_bounds = array<i64: 2, 1>, scalar_prefetch = 0 : i64, scratch_operands = 0 : i64, tpu.core_type = #tpu.core_type<tc>, window_params = [{transform_indices = @transform_0, window_bounds = array<i64: 1, 1, 4, 422>}, {pipeline_mode = #tpu.pipeline_mode<synchronous>, transform_indices = @transform_1, window_bounds = array<i64: 9, 3, 4>}, {pipeline_mode = #tpu.pipeline_mode<synchronous>, transform_indices = @transform_2, window_bounds = array<i64: 3, 1>}, {transform_indices = @transform_3, window_bounds = array<i64: 1, 3, 384>}]} {
    %c0 = arith.constant 0 : index
    %c0_0 = arith.constant 0 : index
    %c0_1 = arith.constant 0 : index
    %c0_2 = arith.constant 0 : index
    %0 = vector.load %arg2[%c0, %c0_0, %c0_1, %c0_2] : memref<1x1x4x422xbf16, #tpu.memory_space<vmem>>, vector<1x1x4x422xbf16>
    %1 = vector.shape_cast %0 : vector<1x1x4x422xbf16> to vector<4x422xbf16>
    %2 = vector.extract_strided_slice %1 {offsets = [0, 0], sizes = [4, 384], strides = [1, 1]} : vector<4x422xbf16> to vector<4x384xbf16>
    %c0_3 = arith.constant 0 : index
    %c0_4 = arith.constant 0 : index
    %c0_5 = arith.constant 0 : index
    %3 = vector.load %arg3[%c0_3, %c0_4, %c0_5] : memref<9x3x4xbf16, #tpu.memory_space<vmem>>, vector<1x3x4xbf16>
    %4 = vector.shape_cast %3 : vector<1x3x4xbf16> to vector<3x4xbf16>
    %cst = arith.constant dense<0.000000e+00> : vector<3x384xf32>
    %5 = tpu.matmul %4, %2, %cst {dimension_numbers = #tpu.dot_dimension_numbers<[1], [0], [0], [1], [0, 0, 1, 1], [], []>} : vector<3x4xbf16>, vector<4x384xbf16>, vector<3x384xf32> -> vector<3x384xf32>
    %6 = vector.extract_strided_slice %1 {offsets = [0, 1], sizes = [4, 384], strides = [1, 1]} : vector<4x422xbf16> to vector<4x384xbf16>
    %c1 = arith.constant 1 : index
    %c0_6 = arith.constant 0 : index
    %c0_7 = arith.constant 0 : index
    %7 = vector.load %arg3[%c1, %c0_6, %c0_7] : memref<9x3x4xbf16, #tpu.memory_space<vmem>>, vector<1x3x4xbf16>
    %8 = vector.shape_cast %7 : vector<1x3x4xbf16> to vector<3x4xbf16>
    %cst_8 = arith.constant dense<0.000000e+00> : vector<3x384xf32>
    %9 = tpu.matmul %8, %6, %cst_8 {dimension_numbers = #tpu.dot_dimension_numbers<[1], [0], [0], [1], [0, 0, 1, 1], [], []>} : vector<3x4xbf16>, vector<4x384xbf16>, vector<3x384xf32> -> vector<3x384xf32>
    %10 = vector.extract_strided_slice %1 {offsets = [0, 2], sizes = [4, 384], strides = [1, 1]} : vector<4x422xbf16> to vector<4x384xbf16>
    %c2 = arith.constant 2 : index
    %c0_9 = arith.constant 0 : index
    %c0_10 = arith.constant 0 : index
    %11 = vector.load %arg3[%c2, %c0_9, %c0_10] : memref<9x3x4xbf16, #tpu.memory_space<vmem>>, vector<1x3x4xbf16>
    %12 = vector.shape_cast %11 : vector<1x3x4xbf16> to vector<3x4xbf16>
    %cst_11 = arith.constant dense<0.000000e+00> : vector<3x384xf32>
    %13 = tpu.matmul %12, %10, %cst_11 {dimension_numbers = #tpu.dot_dimension_numbers<[1], [0], [0], [1], [0, 0, 1, 1], [], []>} : vector<3x4xbf16>, vector<4x384xbf16>, vector<3x384xf32> -> vector<3x384xf32>
    %14 = vector.extract_strided_slice %1 {offsets = [0, 18], sizes = [4, 384], strides = [1, 1]} : vector<4x422xbf16> to vector<4x384xbf16>
    %c3 = arith.constant 3 : index
    %c0_12 = arith.constant 0 : index
    %c0_13 = arith.constant 0 : index
    %15 = vector.load %arg3[%c3, %c0_12, %c0_13] : memref<9x3x4xbf16, #tpu.memory_space<vmem>>, vector<1x3x4xbf16>
    %16 = vector.shape_cast %15 : vector<1x3x4xbf16> to vector<3x4xbf16>
    %cst_14 = arith.constant dense<0.000000e+00> : vector<3x384xf32>
    %17 = tpu.matmul %16, %14, %cst_14 {dimension_numbers = #tpu.dot_dimension_numbers<[1], [0], [0], [1], [0, 0, 1, 1], [], []>} : vector<3x4xbf16>, vector<4x384xbf16>, vector<3x384xf32> -> vector<3x384xf32>
    %18 = vector.extract_strided_slice %1 {offsets = [0, 19], sizes = [4, 384], strides = [1, 1]} : vector<4x422xbf16> to vector<4x384xbf16>
    %c4 = arith.constant 4 : index
    %c0_15 = arith.constant 0 : index
    %c0_16 = arith.constant 0 : index
    %19 = vector.load %arg3[%c4, %c0_15, %c0_16] : memref<9x3x4xbf16, #tpu.memory_space<vmem>>, vector<1x3x4xbf16>
    %20 = vector.shape_cast %19 : vector<1x3x4xbf16> to vector<3x4xbf16>
    %cst_17 = arith.constant dense<0.000000e+00> : vector<3x384xf32>
    %21 = tpu.matmul %20, %18, %cst_17 {dimension_numbers = #tpu.dot_dimension_numbers<[1], [0], [0], [1], [0, 0, 1, 1], [], []>} : vector<3x4xbf16>, vector<4x384xbf16>, vector<3x384xf32> -> vector<3x384xf32>
    %22 = vector.extract_strided_slice %1 {offsets = [0, 20], sizes = [4, 384], strides = [1, 1]} : vector<4x422xbf16> to vector<4x384xbf16>
    %c5 = arith.constant 5 : index
    %c0_18 = arith.constant 0 : index
    %c0_19 = arith.constant 0 : index
    %23 = vector.load %arg3[%c5, %c0_18, %c0_19] : memref<9x3x4xbf16, #tpu.memory_space<vmem>>, vector<1x3x4xbf16>
    %24 = vector.shape_cast %23 : vector<1x3x4xbf16> to vector<3x4xbf16>
    %cst_20 = arith.constant dense<0.000000e+00> : vector<3x384xf32>
    %25 = tpu.matmul %24, %22, %cst_20 {dimension_numbers = #tpu.dot_dimension_numbers<[1], [0], [0], [1], [0, 0, 1, 1], [], []>} : vector<3x4xbf16>, vector<4x384xbf16>, vector<3x384xf32> -> vector<3x384xf32>
    %26 = vector.extract_strided_slice %1 {offsets = [0, 36], sizes = [4, 384], strides = [1, 1]} : vector<4x422xbf16> to vector<4x384xbf16>
    %c6 = arith.constant 6 : index
    %c0_21 = arith.constant 0 : index
    %c0_22 = arith.constant 0 : index
    %27 = vector.load %arg3[%c6, %c0_21, %c0_22] : memref<9x3x4xbf16, #tpu.memory_space<vmem>>, vector<1x3x4xbf16>
    %28 = vector.shape_cast %27 : vector<1x3x4xbf16> to vector<3x4xbf16>
    %cst_23 = arith.constant dense<0.000000e+00> : vector<3x384xf32>
    %29 = tpu.matmul %28, %26, %cst_23 {dimension_numbers = #tpu.dot_dimension_numbers<[1], [0], [0], [1], [0, 0, 1, 1], [], []>} : vector<3x4xbf16>, vector<4x384xbf16>, vector<3x384xf32> -> vector<3x384xf32>
    %30 = vector.extract_strided_slice %1 {offsets = [0, 37], sizes = [4, 384], strides = [1, 1]} : vector<4x422xbf16> to vector<4x384xbf16>
    %c7 = arith.constant 7 : index
    %c0_24 = arith.constant 0 : index
    %c0_25 = arith.constant 0 : index
    %31 = vector.load %arg3[%c7, %c0_24, %c0_25] : memref<9x3x4xbf16, #tpu.memory_space<vmem>>, vector<1x3x4xbf16>
    %32 = vector.shape_cast %31 : vector<1x3x4xbf16> to vector<3x4xbf16>
    %cst_26 = arith.constant dense<0.000000e+00> : vector<3x384xf32>
    %33 = tpu.matmul %32, %30, %cst_26 {dimension_numbers = #tpu.dot_dimension_numbers<[1], [0], [0], [1], [0, 0, 1, 1], [], []>} : vector<3x4xbf16>, vector<4x384xbf16>, vector<3x384xf32> -> vector<3x384xf32>
    %34 = vector.extract_strided_slice %1 {offsets = [0, 38], sizes = [4, 384], strides = [1, 1]} : vector<4x422xbf16> to vector<4x384xbf16>
    %c8 = arith.constant 8 : index
    %c0_27 = arith.constant 0 : index
    %c0_28 = arith.constant 0 : index
    %35 = vector.load %arg3[%c8, %c0_27, %c0_28] : memref<9x3x4xbf16, #tpu.memory_space<vmem>>, vector<1x3x4xbf16>
    %36 = vector.shape_cast %35 : vector<1x3x4xbf16> to vector<3x4xbf16>
    %cst_29 = arith.constant dense<0.000000e+00> : vector<3x384xf32>
    %37 = tpu.matmul %36, %34, %cst_29 {dimension_numbers = #tpu.dot_dimension_numbers<[1], [0], [0], [1], [0, 0, 1, 1], [], []>} : vector<3x4xbf16>, vector<4x384xbf16>, vector<3x384xf32> -> vector<3x384xf32>
    %38 = arith.addf %5, %9 : vector<3x384xf32>
    %39 = arith.addf %38, %13 : vector<3x384xf32>
    %40 = arith.addf %39, %17 : vector<3x384xf32>
    %41 = arith.addf %40, %21 : vector<3x384xf32>
    %42 = arith.addf %41, %25 : vector<3x384xf32>
    %43 = arith.addf %42, %29 : vector<3x384xf32>
    %44 = arith.addf %43, %33 : vector<3x384xf32>
    %45 = arith.addf %44, %37 : vector<3x384xf32>
    %c0_30 = arith.constant 0 : index
    %c0_31 = arith.constant 0 : index
    %46 = vector.load %arg4[%c0_30, %c0_31] : memref<3x1xf32, #tpu.memory_space<vmem>>, vector<3x1xf32>
    %47 = vector.broadcast %46 : vector<3x1xf32> to vector<3x384xf32>
    %48 = arith.addf %45, %47 : vector<3x384xf32>
    %c0_32 = arith.constant 0 : index
    %c0_33 = arith.constant 0 : index
    %c0_34 = arith.constant 0 : index
    %49 = vector.load %arg5[%c0_32, %c0_33, %c0_34] : memref<1x3x384xf32, #tpu.memory_space<vmem>>, vector<1x3x384xf32>
    %50 = vector.shape_cast %49 : vector<1x3x384xf32> to vector<3x384xf32>
    %51 = vector.shape_cast %48 : vector<3x384xf32> to vector<1x3x384xf32>
    tpu.vector_store %arg5[%c0_32, %c0_33, %c0_34], %51 {strides = array<i32>} : memref<1x3x384xf32, #tpu.memory_space<vmem>>, vector<1x3x384xf32>,
    return
  }
  func.func @transform_0(%arg0: i32, %arg1: i32) -> (i32, i32, i32, i32) {
    %c0_i32 = arith.constant 0 : i32
    %c0_i32_0 = arith.constant 0 : i32
    %c0_i32_1 = arith.constant 0 : i32
    return %arg0, %arg1, %c0_i32, %c0_i32_0 : i32, i32, i32, i32
  }
  func.func @transform_1(%arg0: i32, %arg1: i32) -> (i32, i32, i32) {
    %c0_i32 = arith.constant 0 : i32
    %c0_i32_0 = arith.constant 0 : i32
    %c0_i32_1 = arith.constant 0 : i32
    %c0_i32_2 = arith.constant 0 : i32
    return %c0_i32, %c0_i32_0, %c0_i32_1 : i32, i32, i32
  }
  func.func @transform_2(%arg0: i32, %arg1: i32) -> (i32, i32) {
    %c0_i32 = arith.constant 0 : i32
    %c0_i32_0 = arith.constant 0 : i32
    %c0_i32_1 = arith.constant 0 : i32
    return %c0_i32, %c0_i32_0 : i32, i32
  }
  func.func @transform_3(%arg0: i32, %arg1: i32) -> (i32, i32, i32) {
    %c0_i32 = arith.constant 0 : i32
    %c0_i32_0 = arith.constant 0 : i32
    return %arg0, %c0_i32, %arg1 : i32, i32, i32
  }
}

</mosaic_0001>

<bundles_post_ra>
// kernel: segmentation_tta_forward.1
= control target key start
LH: loop header
LB: loop body
LE: loop exit
PB: predicated region body
PF: predicated region fallthrough
CT: control target
= control target key end

     0   :  { %s1519_s12 = smov 0   ;;  %s1521_s13 = smov 0   ;;  %s1720_s0 = inlined_call_operand.vmem [shape: bf16[2,1,4,422], index: 0, kind: input, shape index: {}]   ;;  %s1721_s1 = inlined_call_operand.vmem [shape: bf16[9,3,4], index: 1, kind: input, shape index: {}]   ;;  %s1722_s2 = inlined_call_operand.vmem [shape: f32[3,1], index: 2, kind: input, shape index: {}]   ;;  %s1723_s3 = inlined_call_operand.vmem [shape: f32[2,3,384], index: 3, kind: output, shape index: {}]  }
   0x1   :  { %s1523_s14 = smov 0  }
   0x2 LB: > { %s25_s15 = sadd.s32 1, %s1481_s13  ;;  %p1310_p0 = scmp.ge.s32.totalorder %s1485_s14, 1  ;;  %s1485_s14 = sphi %s1523_s14, %s13_s14   ;;  %s1481_s13 = sphi %s1521_s13, %s1725_s13   ;;  %s1477_s12 = sphi %s1519_s12, %s1724_s12  }
   0x3   : > { %p27_p1 = scmp.ge.s32.totalorder %s25_s15, 2  ;;  %p157_p2 = scmp.lt.s32.totalorder %s1485_s14, 3 }
   0x5   : > { %s1727_s15 = smov (%p27_p1, %s25_s15), 0  ;;  %p158_p3 = pnand %p1310_p0, %p157_p2 }
   0x6   : > { %p189_p4 = scmp.lt.s32.totalorder (!%p158_p3), %s1477_s12, 1  ;;  %v218_v0 = vlaneseq (!%p158_p3)  ;;  %v1487_v1 = vmov (!%p158_p3), 1983009808   ;;  %v1488_v5 = vmov (!%p158_p3), 0.0   ;;  %v1489_v6 = vmov (!%p158_p3), 0   ;;  %s1491_s20 = smov (!%p158_p3), 127  }
   0x7   : > { %161 = sbr.rel (%p158_p3) target bundleno = 442 (0x1ba), region = 32  ;;  %v216_v2 = vunpack.c.l.s4 (!%p158_p3), %v1487_v1  ;;  %1370 = vmatprep.subr.bf16.mxu1 (!%p158_p3), %v1488_v5  ;;  %289 = vmatprep.mubr.bf16.mxu0 (!%p158_p3), %v1489_v6  ;;  %vm1490_vm0 = vmmov (!%p158_p3), 0   ;;  %s1492_s21 = smov (!%p158_p3), 126   ;;  %v1201_v14 = vld [vmem:[%s1722_s2] sm:$0x7] (!%p158_p3)  ;;  %vm239_vm1 = vcmask (!%p158_p3), 1039360  }
   0x8   : > { %v219_v3 = vshrl.u32 (!%p158_p3), %v218_v0, 7  ;;  %1461 = vset.pattern.permute.xlu0 (!%p158_p3), %v1489_v6  ;;  %1372 = vmatprep.mubr.msk.bf16.mxu1 (!%p158_p3), %vm1490_vm0, %v1488_v5  ;;  %s1493_s22 = smov (!%p158_p3), 110   ;;  %s1494_s23 = smov (!%p158_p3), 109   ;;  %vm247_vm2 = vcmask (!%p158_p3), 1041408   ;;  %v1314_v23 = vld [vmem:[%s1721_s1 + $0x2] sm:$0x3] (!%p158_p3) }
   0x9   : > { %v217_v4 = vunpack.c.0.s8 (!%p158_p3), %v216_v2  ;;  %s1495_s24 = smov (!%p158_p3), 108   ;;  %s1496_s25 = smov (!%p158_p3), 92   ;;  %vm243_vm3 = vcmask (!%p158_p3), 31744   ;;  %vm348_vm4 = vcmask (!%p158_p3), 1031168   ;;  %v1318_v33 = vld [vmem:[%s1721_s1 + $0x4] sm:$0x3] (!%p158_p3) }
   0xa   : > { %s1497_s26 = smov (!%p158_p3), 91   ;;  %s1498_s27 = smov (!%p158_p3), 90   ;;  %vm455_vm5 = vcmask (!%p158_p3), 900096   ;;  %v1322_v43 = vld [vmem:[%s1721_s1 + $0x6] sm:$0x3] (!%p158_p3)  ;;  %vm562_vm6 = vcmask (!%p158_p3), 891904  }
   0xb   : > { %v220_v7 = vsub.s32 (!%p158_p3), %v217_v4, %v219_v3  ;;  %v1326_v53 = vld [vmem:[%s1721_s1 + $0x8] sm:$0x3] (!%p158_p3)  ;;  %vm669_vm7 = vcmask (!%p158_p3), 883712   ;;  %v1330_v63 = vld [vmem:[%s1721_s1 + $0xa] sm:$0x3] (!%p158_p3)  ;;  %vm776_vm8 = vcmask (!%p158_p3), 752640  }
   0xc   : > { %vm883_vm9 = vcmask (!%p158_p3), 744448   ;;  %vm990_vm10 = vcmask (!%p158_p3), 736256  }
   0xe   : > { %s1729_s12 = smov (!%p189_p4, %s1477_s12), 1 }
   0xf   : > { %s1351_s16 = sshll.u32 %s1729_s12, 3 }
  0x10   : > { %s197_s19 = scalar_lea.vmem %s1720_s0, %s1351_s16 }
  0x11   : > { %v209_v8 = vld [vmem:[%s197_s19] sm:$0xff] }
  0x12   : > { %v1548_v9 = vrot.slane %v209_v8, %v220_v7  ;;  %v214_v10 = vcombine.high %v209_v8, %v209_v8 }
  0x14   : > { %231 = vrot.lane.b32.xlu0 %v1548_v9, %s1491_s20  ;;  %v1551_v11 = vrot.slane %v214_v10, %v220_v7  ;;  %v1555_v12 = vcombine.high %v1548_v9, %v1548_v9 }
  0x16   : > { %235 = vrot.lane.b32.xlu1 %v1551_v11, %s1491_s20  ;;  %v230_v13 = vcombine.high %v1551_v11, %v1551_v11 }
  0x18   : > { %233 = vrot.lane.b32.xlu0 %v1555_v12, %s1491_s20 }
  0x1a   : > { %237 = vrot.lane.b32.xlu1 %v230_v13, %s1491_s20 }
  0x1c   : > { %340 = vrot.lane.b32.xlu0 %v1548_v9, %s1492_s21 }
  0x1e   : > { %342 = vrot.lane.b32.xlu1 %v1555_v12, %s1492_s21 }
  0x20   : > { %344 = vrot.lane.b32.xlu0 %v1551_v11, %s1492_s21 }
  0x22   : > { %346 = vrot.lane.b32.xlu1 %v230_v13, %s1492_s21 }
  0x24   : > { %447 = vrot.lane.b32.xlu0 %v1548_v9, %s1493_s22 }
  0x26   : > { %449 = vrot.lane.b32.xlu1 %v1555_v12, %s1493_s22 }
  0x28   : > { %451 = vrot.lane.b32.xlu0 %v1551_v11, %s1493_s22 }
  0x2a   : > { %453 = vrot.lane.b32.xlu1 %v230_v13, %s1493_s22 }
  0x2c   : > { %554 = vrot.lane.b32.xlu0 %v1548_v9, %s1494_s23 }
  0x2e   : > { %556 = vrot.lane.b32.xlu1 %v1555_v12, %s1494_s23 }
  0x30   : > { %558 = vrot.lane.b32.xlu0 %v1551_v11, %s1494_s23 }
  0x32   : > { %560 = vrot.lane.b32.xlu1 %v230_v13, %s1494_s23 }
  0x34   : > { %661 = vrot.lane.b32.xlu0 %v1548_v9, %s1495_s24 }
  0x36   : > { %663 = vrot.lane.b32.xlu1 %v1555_v12, %s1495_s24 }
  0x38   : > { %665 = vrot.lane.b32.xlu0 %v1551_v11, %s1495_s24 }
  0x3a   : > { %667 = vrot.lane.b32.xlu1 %v230_v13, %s1495_s24 }
  0x3c   : > { %768 = vrot.lane.b32.xlu0 %v1548_v9, %s1496_s25 }
  0x3e   : > { %770 = vrot.lane.b32.xlu1 %v1555_v12, %s1496_s25 }
  0x40   : > { %772 = vrot.lane.b32.xlu0 %v1551_v11, %s1496_s25 }
  0x42   : > { %774 = vrot.lane.b32.xlu1 %v230_v13, %s1496_s25  ;;  %s1424_s25 = smul.u32 12, %s1729_s12 }
  0x44   : > { %875 = vrot.lane.b32.xlu0 %v1548_v9, %s1497_s26  ;;  %s206_s28 = scalar_lea.vmem %s1723_s3, %s1424_s25 }
  0x46   : > { %877 = vrot.lane.b32.xlu1 %v1555_v12, %s1497_s26 }
  0x48   : > { %879 = vrot.lane.b32.xlu0 %v1551_v11, %s1497_s26 }
  0x4a   : > { %881 = vrot.lane.b32.xlu1 %v230_v13, %s1497_s26 }
  0x4c   : > { %982 = vrot.lane.b32.xlu0 %v1548_v9, %s1498_s27 }
  0x4e   : > { %984 = vrot.lane.b32.xlu1 %v1555_v12, %s1498_s27 }
  0x50   : > { %986 = vrot.lane.b32.xlu0 %v1551_v11, %s1498_s27 }
  0x52   : > { %988 = vrot.lane.b32.xlu1 %v230_v13, %s1498_s27 }
  0x54   : > { %1204 = vperm.xlu0 %1461, %v1201_v14   ;;  %v1334_v14 = vld [vmem:[%s1721_s1 + $0xc] sm:$0x3] }
  0x86   : > { %v232_v15 = vpop.permute.xlu0 %231 }
  0x88   : > { %v236_v16 = vpop.permute.xlu1 %235 }
  0x8a   : > { %v234_v17 = vpop.permute.xlu0 %233 }
  0x8b   : > { %v241_v18 = vsel %vm239_vm1, %v234_v17, %v236_v16  ;;  %v240_v19 = vsel %vm239_vm1, %v232_v15, %v234_v17 }
  0x8c   : > { %1315 = vmatprep.subr.msk.bf16.mxu0 %vm247_vm2, %v241_v18  ;;  %v238_v20 = vpop.permute.xlu1 %237  ;;  %v249_v21 = vsel %vm247_vm2, %v240_v19, 0 }
  0x8d   : > { %258 = vmatpush1.bf16.msra.mxu0 %v249_v21  ;;  %v242_v22 = vsel %vm239_vm1, %v236_v16, %v238_v20 }
  0x8e   : > { %v341_v24 = vpop.permute.xlu0 %340  ;;  %v255_v25 = vsel %vm247_vm2, %v242_v22, 0 }
  0x8f   : > { %1371 = vmatpush3.bf16.msra.mxu1 %v255_v25 }
  0x90   : > { %1316 = vmatmul.mubr.msk.bf16.vlgmr.msra.gmra.mrb[0].mxu0 %vm243_vm3, %v1314_v23  ;;  %v343_v26 = vpop.permute.xlu1 %342  ;;  %1376 = vmatprep.subr.bf16.mxu1 %v1488_v5 }
  0x91   : > { %v349_v27 = vsel %vm348_vm4, %v341_v24, %v343_v26  ;;  %396 = vmatprep.mubr.bf16.mxu0 %v1489_v6  ;;  %v1338_v24 = vld [vmem:[%s1721_s1 + $0xe] sm:$0x3] }
  0x92   : > { %v345_v28 = vpop.permute.xlu0 %344  ;;  %1373 = vmatmul.mubr.msk.bf16.vlgmr.msra.gmra.mrb[0].mxu1 %vm243_vm3, %v1314_v23  ;;  %v356_v30 = vsel %vm247_vm2, %v349_v27, 0 }
  0x93   : > { %v350_v29 = vsel %vm348_vm4, %v343_v26, %v345_v28  ;;  %1378 = vmatprep.mubr.msk.bf16.mxu1 %vm1490_vm0, %v1488_v5 }
  0x94   : > { %1319 = vmatprep.subr.msk.bf16.mxu0 %vm247_vm2, %v350_v29  ;;  %v347_v31 = vpop.permute.xlu1 %346 }
  0x95   : > { %v351_v32 = vsel %vm348_vm4, %v345_v28, %v347_v31  ;;  %365 = vmatpush1.bf16.msra.mxu0 %v356_v30 }
  0x96   : > { %v362_v34 = vsel %vm247_vm2, %v351_v32, 0  ;;  %v448_v35 = vpop.permute.xlu0 %447 }
  0x97   : > { %1377 = vmatpush3.bf16.msra.mxu1 %v362_v34  ;;  %v1342_v34 = vld [vmem:[%s1721_s1 + $0x10] sm:$0x3] }
  0x98   : > { %1320 = vmatmul.mubr.msk.bf16.vlgmr.msra.gmra.mrb[4].mxu0 %vm243_vm3, %v1318_v33  ;;  %v450_v36 = vpop.permute.xlu1 %449  ;;  %1382 = vmatprep.subr.bf16.mxu1 %v1488_v5 }
  0x99   : > { %v456_v37 = vsel %vm455_vm5, %v448_v35, %v450_v36  ;;  %503 = vmatprep.mubr.bf16.mxu0 %v1489_v6 }
  0x9a   : > { %v452_v38 = vpop.permute.xlu0 %451  ;;  %1379 = vmatmul.mubr.msk.bf16.vlgmr.msra.gmra.mrb[4].mxu1 %vm243_vm3, %v1318_v33  ;;  %v463_v40 = vsel %vm247_vm2, %v456_v37, 0  ;;  %v1097_v37 = vsel %vm247_vm2, %v1551_v11, 0 }
  0x9b   : > { %v457_v39 = vsel %vm455_vm5, %v450_v36, %v452_v38  ;;  %1384 = vmatprep.mubr.msk.bf16.mxu1 %vm1490_vm0, %v1488_v5  ;;  %v1091_v36 = vsel %vm247_vm2, %v1548_v9, 0  ;;  %v210_v9 = vld [vmem:[%s1721_s1] sm:$0x3] }
  0x9c   : > { %1323 = vmatprep.subr.msk.bf16.mxu0 %vm247_vm2, %v457_v39  ;;  %v454_v41 = vpop.permute.xlu1 %453 }
  0x9d   : > { %v458_v42 = vsel %vm455_vm5, %v452_v38, %v454_v41  ;;  %472 = vmatpush1.bf16.msra.mxu0 %v463_v40 }
  0x9e   : > { %v469_v44 = vsel %vm247_vm2, %v458_v42, 0  ;;  %v555_v45 = vpop.permute.xlu0 %554 }
  0x9f   : > { %1383 = vmatpush3.bf16.msra.mxu1 %v469_v44 }
  0xa0   : > { %1324 = vmatmul.mubr.msk.bf16.vlgmr.msra.gmra.mrb[8].mxu0 %vm243_vm3, %v1322_v43  ;;  %v557_v46 = vpop.permute.xlu1 %556  ;;  %1388 = vmatprep.subr.bf16.mxu1 %v1488_v5 }
  0xa1   : > { %v563_v47 = vsel %vm562_vm6, %v555_v45, %v557_v46  ;;  %610 = vmatprep.mubr.bf16.mxu0 %v1489_v6 }
  0xa2   : > { %v559_v48 = vpop.permute.xlu0 %558  ;;  %1385 = vmatmul.mubr.msk.bf16.vlgmr.msra.gmra.mrb[8].mxu1 %vm243_vm3, %v1322_v43  ;;  %v570_v50 = vsel %vm247_vm2, %v563_v47, 0 }
  0xa3   : > { %v564_v49 = vsel %vm562_vm6, %v557_v46, %v559_v48  ;;  %1390 = vmatprep.mubr.msk.bf16.mxu1 %vm1490_vm0, %v1488_v5 }
  0xa4   : > { %1327 = vmatprep.subr.msk.bf16.mxu0 %vm247_vm2, %v564_v49  ;;  %v561_v51 = vpop.permute.xlu1 %560 }
  0xa5   : > { %v565_v52 = vsel %vm562_vm6, %v559_v48, %v561_v51  ;;  %579 = vmatpush1.bf16.msra.mxu0 %v570_v50 }
  0xa6   : > { %v576_v54 = vsel %vm247_vm2, %v565_v52, 0  ;;  %v662_v55 = vpop.permute.xlu0 %661 }
  0xa7   : > { %1389 = vmatpush3.bf16.msra.mxu1 %v576_v54 }
  0xa8   : > { %1328 = vmatmul.mubr.msk.bf16.vlgmr.msra.gmra.mrb[12].mxu0 %vm243_vm3, %v1326_v53  ;;  %v664_v56 = vpop.permute.xlu1 %663  ;;  %1394 = vmatprep.subr.bf16.mxu1 %v1488_v5 }
  0xa9   : > { %v670_v57 = vsel %vm669_vm7, %v662_v55, %v664_v56  ;;  %717 = vmatprep.mubr.bf16.mxu0 %v1489_v6 }
  0xaa   : > { %v666_v58 = vpop.permute.xlu0 %665  ;;  %1391 = vmatmul.mubr.msk.bf16.vlgmr.msra.gmra.mrb[12].mxu1 %vm243_vm3, %v1326_v53  ;;  %v677_v60 = vsel %vm247_vm2, %v670_v57, 0 }
  0xab   : > { %v671_v59 = vsel %vm669_vm7, %v664_v56, %v666_v58  ;;  %1396 = vmatprep.mubr.msk.bf16.mxu1 %vm1490_vm0, %v1488_v5 }
  0xac   : > { %1331 = vmatprep.subr.msk.bf16.mxu0 %vm247_vm2, %v671_v59  ;;  %v668_v61 = vpop.permute.xlu1 %667 }
  0xad   : > { %v672_v62 = vsel %vm669_vm7, %v666_v58, %v668_v61  ;;  %686 = vmatpush1.bf16.msra.mxu0 %v677_v60 }
  0xae   : > { %v683_v0 = vsel %vm247_vm2, %v672_v62, 0  ;;  %v769_v1 = vpop.permute.xlu0 %768 }
  0xaf   : > { %1395 = vmatpush3.bf16.msra.mxu1 %v683_v0 }
  0xb0   : > { %1332 = vmatmul.mubr.msk.bf16.vlgmr.msra.gmra.mrb[16].mxu0 %vm243_vm3, %v1330_v63  ;;  %v771_v2 = vpop.permute.xlu1 %770  ;;  %1400 = vmatprep.subr.bf16.mxu1 %v1488_v5 }
  0xb1   : > { %v777_v3 = vsel %vm776_vm8, %v769_v1, %v771_v2  ;;  %824 = vmatprep.mubr.bf16.mxu0 %v1489_v6 }
  0xb2   : > { %v773_v4 = vpop.permute.xlu0 %772  ;;  %1397 = vmatmul.mubr.msk.bf16.vlgmr.msra.gmra.mrb[16].mxu1 %vm243_vm3, %v1330_v63  ;;  %v784_v8 = vsel %vm247_vm2, %v777_v3, 0 }
  0xb3   : > { %v778_v7 = vsel %vm776_vm8, %v771_v2, %v773_v4  ;;  %1402 = vmatprep.mubr.msk.bf16.mxu1 %vm1490_vm0, %v1488_v5 }
  0xb4   : > { %1335 = vmatprep.subr.msk.bf16.mxu0 %vm247_vm2, %v778_v7  ;;  %v775_v10 = vpop.permute.xlu1 %774 }
  0xb5   : > { %v779_v13 = vsel %vm776_vm8, %v773_v4, %v775_v10  ;;  %793 = vmatpush1.bf16.msra.mxu0 %v784_v8 }
  0xb6   : > { %v790_v15 = vsel %vm247_vm2, %v779_v13, 0  ;;  %v876_v16 = vpop.permute.xlu0 %875 }
  0xb7   : > { %1401 = vmatpush3.bf16.msra.mxu1 %v790_v15 }
  0xb8   : > { %1336 = vmatmul.mubr.msk.bf16.vlgmr.msra.gmra.mrb[20].mxu0 %vm243_vm3, %v1334_v14  ;;  %v878_v17 = vpop.permute.xlu1 %877  ;;  %1406 = vmatprep.subr.bf16.mxu1 %v1488_v5 }
  0xb9   : > { %v884_v18 = vsel %vm883_vm9, %v876_v16, %v878_v17  ;;  %931 = vmatprep.mubr.bf16.mxu0 %v1489_v6 }
  0xba   : > { %v880_v19 = vpop.permute.xlu0 %879  ;;  %1403 = vmatmul.mubr.msk.bf16.vlgmr.msra.gmra.mrb[20].mxu1 %vm243_vm3, %v1334_v14  ;;  %v891_v21 = vsel %vm247_vm2, %v884_v18, 0 }
  0xbb   : > { %v885_v20 = vsel %vm883_vm9, %v878_v17, %v880_v19  ;;  %1408 = vmatprep.mubr.msk.bf16.mxu1 %vm1490_vm0, %v1488_v5 }
  0xbc   : > { %1339 = vmatprep.subr.msk.bf16.mxu0 %vm247_vm2, %v885_v20  ;;  %v882_v22 = vpop.permute.xlu1 %881 }
  0xbd   : > { %v886_v23 = vsel %vm883_vm9, %v880_v19, %v882_v22  ;;  %900 = vmatpush1.bf16.msra.mxu0 %v891_v21 }
  0xbe   : > { %v897_v25 = vsel %vm247_vm2, %v886_v23, 0  ;;  %v983_v26 = vpop.permute.xlu0 %982 }
  0xbf   : > { %1407 = vmatpush3.bf16.msra.mxu1 %v897_v25 }
  0xc0   : > { %1340 = vmatmul.mubr.msk.bf16.vlgmr.msra.gmra.mrb[24].mxu0 %vm243_vm3, %v1338_v24  ;;  %v985_v27 = vpop.permute.xlu1 %984  ;;  %1412 = vmatprep.subr.bf16.mxu1 %v1488_v5 }
  0xc1   : > { %v991_v28 = vsel %vm990_vm10, %v983_v26, %v985_v27  ;;  %1038 = vmatprep.mubr.bf16.mxu0 %v1489_v6 }
  0xc2   : > { %v987_v29 = vpop.permute.xlu0 %986  ;;  %1409 = vmatmul.mubr.msk.bf16.vlgmr.msra.gmra.mrb[24].mxu1 %vm243_vm3, %v1338_v24  ;;  %v998_v31 = vsel %vm247_vm2, %v991_v28, 0 }
  0xc3   : > { %v992_v30 = vsel %vm990_vm10, %v985_v27, %v987_v29  ;;  %1414 = vmatprep.mubr.msk.bf16.mxu1 %vm1490_vm0, %v1488_v5 }
  0xc4   : > { %1343 = vmatprep.subr.msk.bf16.mxu0 %vm247_vm2, %v992_v30  ;;  %v989_v32 = vpop.permute.xlu1 %988 }
  0xc5   : > { %v993_v33 = vsel %vm990_vm10, %v987_v29, %v989_v32  ;;  %1007 = vmatpush1.bf16.msra.mxu0 %v998_v31 }
  0xc6   : > { %v1004_v35 = vsel %vm247_vm2, %v993_v33, 0  ;;  %1346 = vmatprep.subr.msk.bf16.mxu0 %vm247_vm2, %v1555_v12 }
  0xc7   : > { %1413 = vmatpush3.bf16.msra.mxu1 %v1004_v35 }
  0xc8   : > { %1344 = vmatmul.mubr.msk.bf16.vlgmr.msra.gmra.mrb[28].mxu0 %vm243_vm3, %v1342_v34  ;;  %1418 = vmatprep.subr.bf16.mxu1 %v1488_v5 }
  0xc9   : > { %1100 = vmatpush1.bf16.msra.mxu0 %v1091_v36  ;;  %1131 = vmatprep.mubr.bf16.mxu0 %v1489_v6 }
  0xca   : > { %1415 = vmatmul.mubr.msk.bf16.vlgmr.msra.gmra.mrb[28].mxu1 %vm243_vm3, %v1342_v34 }
  0xcb   : > { %1419 = vmatpush3.bf16.msra.mxu1 %v1097_v37  ;;  %1420 = vmatprep.mubr.msk.bf16.mxu1 %vm1490_vm0, %v1488_v5 }
  0xd0   : > { %1347 = vmatmul.mubr.msk.bf16.vlgmr.msra.gmra.mrb[32].mxu0 %vm243_vm3, %v210_v9 }
  0xd2   : > { %1421 = vmatmul.mubr.msk.bf16.vlgmr.msra.gmra.mrb[32].mxu1 %vm243_vm3, %v210_v9 }
 0x163   : > { %v1692_v12 = vpop.f32.mrb[0].mxu0 }
 0x164   : > { %v1694_v11 = vpop.f32.mrb[1].mxu0 }
 0x165   : > { %v295_v38 = vpop.f32.mrb[2].mxu0  ;;  %v1696_v6 = vpop.f32.mrb[0].mxu1 }
 0x166   : > { %v296_v39 = vpop.f32.mrb[3].mxu0  ;;  %v1374_v40 = vpop.f32.mrb[1].mxu1 }
 0x167   : > { %v335_v41 = vpop.f32.mrb[2].mxu1 }
 0x168   : > { %v1375_v42 = vpop.f32.mrb[3].mxu1 }
 0x16b   : > { %v398_v5 = vpop.f32.mrb[4].mxu0 }
 0x16c   : > { %v1698_v43 = vpop.f32.mrb[5].mxu0 }
 0x16d   : > { %v402_v44 = vpop.f32.mrb[6].mxu0  ;;  %v1700_v45 = vpop.f32.mrb[4].mxu1 }
 0x16e   : > { %v403_v46 = vpop.f32.mrb[7].mxu0  ;;  %v1380_v47 = vpop.f32.mrb[5].mxu1 }
 0x16f   : > { %v442_v48 = vpop.f32.mrb[6].mxu1 }
 0x170   : > { %v1381_v49 = vpop.f32.mrb[7].mxu1 }
 0x173   : > { %v505_v50 = vpop.f32.mrb[8].mxu0 }
 0x174   : > { %v507_v51 = vpop.f32.mrb[9].mxu0 }
 0x175   : > { %v509_v52 = vpop.f32.mrb[10].mxu0  ;;  %v546_v53 = vpop.f32.mrb[8].mxu1 }
 0x176   : > { %v510_v54 = vpop.f32.mrb[11].mxu0  ;;  %v1386_v55 = vpop.f32.mrb[9].mxu1 }
 0x177   : > { %v549_v56 = vpop.f32.mrb[10].mxu1 }
 0x178   : > { %v1387_v57 = vpop.f32.mrb[11].mxu1 }
 0x17b   : > { %v612_v58 = vpop.f32.mrb[12].mxu0 }
 0x17c   : > { %v614_v59 = vpop.f32.mrb[13].mxu0 }
 0x17d   : > { %v616_v60 = vpop.f32.mrb[14].mxu0  ;;  %v653_v61 = vpop.f32.mrb[12].mxu1 }
 0x17e   : > { %v617_v62 = vpop.f32.mrb[15].mxu0  ;;  %v1392_v63 = vpop.f32.mrb[13].mxu1 }
 0x17f   : > { %v656_v0 = vpop.f32.mrb[14].mxu1 }
 0x180   : > { %v1393_v1 = vpop.f32.mrb[15].mxu1 }
 0x183   : > { %v719_v2 = vpop.f32.mrb[16].mxu0 }
 0x184   : > { %v721_v3 = vpop.f32.mrb[17].mxu0 }
 0x185   : > { %v723_v4 = vpop.f32.mrb[18].mxu0  ;;  %v760_v7 = vpop.f32.mrb[16].mxu1 }
 0x186   : > { %v724_v8 = vpop.f32.mrb[19].mxu0  ;;  %v1398_v10 = vpop.f32.mrb[17].mxu1 }
 0x187   : > { %v763_v13 = vpop.f32.mrb[18].mxu1 }
 0x188   : > { %v1399_v14 = vpop.f32.mrb[19].mxu1 }
 0x18b   : > { %v826_v15 = vpop.f32.mrb[20].mxu0 }
 0x18c   : > { %v828_v16 = vpop.f32.mrb[21].mxu0 }
 0x18d   : > { %v830_v17 = vpop.f32.mrb[22].mxu0  ;;  %v867_v18 = vpop.f32.mrb[20].mxu1 }
 0x18e   : > { %v831_v19 = vpop.f32.mrb[23].mxu0  ;;  %v1404_v20 = vpop.f32.mrb[21].mxu1 }
 0x18f   : > { %v870_v21 = vpop.f32.mrb[22].mxu1 }
 0x190   : > { %v1405_v22 = vpop.f32.mrb[23].mxu1 }
 0x193   : > { %v933_v23 = vpop.f32.mrb[24].mxu0 }
 0x194   : > { %v935_v24 = vpop.f32.mrb[25].mxu0 }
 0x195   : > { %v937_v25 = vpop.f32.mrb[26].mxu0  ;;  %v974_v26 = vpop.f32.mrb[24].mxu1 }
 0x196   : > { %v938_v27 = vpop.f32.mrb[27].mxu0  ;;  %v1410_v28 = vpop.f32.mrb[25].mxu1 }
 0x197   : > { %v977_v29 = vpop.f32.mrb[26].mxu1 }
 0x198   : > { %v1411_v30 = vpop.f32.mrb[27].mxu1 }
 0x19b   : > { %v1040_v31 = vpop.f32.mrb[28].mxu0 }
 0x19c   : > { %v1042_v32 = vpop.f32.mrb[29].mxu0 }
 0x19d   : > { %v1044_v33 = vpop.f32.mrb[30].mxu0  ;;  %v1081_v34 = vpop.f32.mrb[28].mxu1 }
 0x19e   : > { %v1045_v35 = vpop.f32.mrb[31].mxu0  ;;  %v1416_v36 = vpop.f32.mrb[29].mxu1 }
 0x19f   : > { %v1084_v37 = vpop.f32.mrb[30].mxu1 }
 0x1a0   : > { %v1417_v9 = vpop.f32.mrb[31].mxu1 }
 0x1a3   : > { %v1133_v38 = vpop.f32.mrb[32].mxu0 }
 0x1a4   : > { %v1134_v39 = vadd.f32 %v1133_v38, %v1692_v12  ;;  %v1135_v40 = vpop.f32.mrb[33].mxu0 }
 0x1a5   : > { %v1136_v41 = vadd.f32 %v1135_v40, %v1694_v11  ;;  %v1174_v42 = vpop.f32.mrb[32].mxu1  ;;  %v1137_v44 = vpop.f32.mrb[34].mxu0 }
 0x1a6   : > { %v1180_v46 = vadd.f32 %v1134_v39, %v398_v5  ;;  %v1175_v47 = vadd.f32 %v1174_v42, %v1696_v6  ;;  %v1138_v48 = vpop.f32.mrb[35].mxu0  ;;  %v1422_v49 = vpop.f32.mrb[33].mxu1 }
 0x1a7   : > { %v1181_v52 = vadd.f32 %v1136_v41, %v1698_v43  ;;  %v1177_v54 = vpop.f32.mrb[34].mxu1  ;;  %v1205_v43 = vpop.permute.xlu0 %1204 }
 0x1a8   : > { %v1183_v55 = vadd.f32 %v1180_v46, %v505_v50  ;;  %v1182_v56 = vadd.f32 %v1175_v47, %v1700_v45  ;;  %v1423_v57 = vpop.f32.mrb[35].mxu1 }
 0x1a9   : > { %v1184_v60 = vadd.f32 %v1181_v52, %v507_v51 }
 0x1aa   : > { %v1186_v12 = vadd.f32 %v1183_v55, %v612_v58  ;;  %v1185_v62 = vadd.f32 %v1182_v56, %v546_v53 }
 0x1ab   : > { %v1187_v63 = vadd.f32 %v1184_v60, %v614_v59 }
 0x1ac   : > { %v1189_v11 = vadd.f32 %v1186_v12, %v719_v2  ;;  %v1188_v0 = vadd.f32 %v1185_v62, %v653_v61 }
 0x1ad   : > { %v1190_v1 = vadd.f32 %v1187_v63, %v721_v3 }
 0x1ae   : > { %v1191_v5 = vadd.f32 %v1188_v0, %v760_v7  ;;  %v1192_v4 = vadd.f32 %v1189_v11, %v826_v15 }
 0x1af   : > { %v1193_v6 = vadd.f32 %v1190_v1, %v828_v16 }
 0x1b0   : > { %v1194_v8 = vadd.f32 %v1191_v5, %v867_v18  ;;  %v1195_v10 = vadd.f32 %v1192_v4, %v933_v23 }
 0x1b1   : > { %v1196_v13 = vadd.f32 %v1193_v6, %v935_v24 }
 0x1b2   : > { %v1197_v14 = vadd.f32 %v1194_v8, %v974_v26  ;;  %v1198_v50 = vadd.f32 %v1195_v10, %v1040_v31 }
 0x1b3   : > { %v1199_v17 = vadd.f32 %v1196_v13, %v1042_v32 }
 0x1b4   : > { %v1200_v45 = vadd.f32 %v1197_v14, %v1081_v34  ;;  %v1207_v19 = vadd.f32 %v1205_v43, %v1198_v50 }
 0x1b5   : > { %v1208_v51 = vadd.f32 %v1205_v43, %v1199_v17 }
 0x1b6   : > { %v1209_v53 = vadd.f32 %v1205_v43, %v1200_v45 }
 0x1b7   : > { %v1212_v58 = vcombine.low %v1207_v19, %v1208_v51 }
 0x1b8   : > { %1215 = vst [vmem:[%s206_s28 + $0x8] sm:$0x7] %v1209_v53 }
 0x1b9   : > { %1214 = vst [vmem:[%s206_s28] sm:$0x77] %v1212_v58 }
 0x1ba PF: > { %s13_s14 = sadd.s32 1, %s1485_s14   ;;  %s1724_s12 = smov %s1481_s13 }
 0x1bb   : > { %p10_p5 = scmp.ge.s32.totalorder %s13_s14, 4   ;;  %s1725_s13 = smov %s1727_s15 }
 0x1bd   :  { %12 = sbr.rel (!%p10_p5) target bundleno = 2 (0x2), region = 70 }

</bundles_post_ra>
